<compile_context>
chip_gen: v7x
topology: tpu7x:2x2x1
jax: 0.10.0
libtpu: 0.0.40
codegen_flags: <defaults>
</compile_context>

<pallas_src>
import jax
import jax.numpy as jnp
from jax.experimental import pallas as pl
from jax.experimental.pallas import tpu as pltpu


# ------------------------------- Pallas kernel ----------------------------------
def _fused_policy_kernel(x_ref, w1_ref, b1_ref, w2_ref, b2_ref,
                         w3v_ref, b3v_ref, w3a_ref, b3a_ref,
                         val_ref, act_ref):
    # Layer 1: bf16 MXU operands, f32 accumulate, f32 bias + tanh.
    x = x_ref[...].astype(jnp.bfloat16)                                     # (TB, num_inputs)
    h = jnp.dot(x, w1_ref[...], preferred_element_type=jnp.float32) + b1_ref[...]
    h = jnp.tanh(h)                                                         # f32 (TB, HPAD)

    # Layer 2 (block-diagonal fused hidden-to-hidden).
    h = jnp.dot(h.astype(jnp.bfloat16), w2_ref[...],
                preferred_element_type=jnp.float32) + b2_ref[...]
    h = jnp.tanh(h).astype(jnp.bfloat16)                                    # bf16 (TB, HPAD)

    # Layer 3: two narrow heads written directly (no wide padded slab, no wrapper slicing).
    val_ref[...] = (jnp.dot(h, w3v_ref[...], preferred_element_type=jnp.float32)
                    + b3v_ref[...]).astype(val_ref.dtype)                   # (TB, 1)
    act_ref[...] = (jnp.dot(h, w3a_ref[...], preferred_element_type=jnp.float32)
                    + b3a_ref[...]).astype(act_ref.dtype)                   # (TB, num_outputs)


# -------------------------- fused block-diagonal weights -------------------------
def _round_up(n, m):
    return ((n + m - 1) // m) * m


def build_fused_params(params, num_inputs, num_outputs, hidden_size,
                       weight_dtype=jnp.bfloat16):
    """Precompute block-diagonal, lane-padded weights (done once, outside the kernel).

    Fused hidden layout (width HPAD = round_up(5*H, 128)):
      cols [0:H]            -> critic hidden
      cols [H+i*H:(i+1+1)*H]-> actor_i hidden (fed only from its input quarter)
      padded lanes          -> exact zeros (tanh(0)=0, zero W2/W3 rows) => exact fusion.
    Matmul weights are stored in bf16 (native MXU dtype on v5e/v6e/v7x); biases stay f32.
    """
    H = hidden_size
    each_in = num_inputs // 4
    each_out = num_outputs // 4
    HPAD = _round_up(5 * H, 128)

    W1 = jnp.zeros((num_inputs, HPAD), jnp.float32).at[:, :H].set(params["cw1"])
    b1 = jnp.zeros((1, HPAD), jnp.float32).at[:, :H].set(params["cb1"])
    W2 = jnp.zeros((HPAD, HPAD), jnp.float32).at[:H, :H].set(params["cw2"])
    b2 = jnp.zeros((1, HPAD), jnp.float32).at[:, :H].set(params["cb2"])
    W3v = jnp.zeros((HPAD, 1), jnp.float32).at[:H, :].set(params["cw3"])
    b3v = params["cb3"].astype(jnp.float32)                       # (1, 1)
    W3a = jnp.zeros((HPAD, num_outputs), jnp.float32)
    b3a = jnp.zeros((1, num_outputs), jnp.float32)

    for i in range(4):
        r0, r1 = H + i * H, H + (i + 1) * H          # fused-hidden slot for actor i
        c0, c1 = i * each_out, (i + 1) * each_out
        W1 = W1.at[i * each_in:(i + 1) * each_in, r0:r1].set(params["aw1"][i])
        b1 = b1.at[:, r0:r1].set(params["ab1"][i])
        W2 = W2.at[r0:r1, r0:r1].set(params["aw2"][i])
        b2 = b2.at[:, r0:r1].set(params["ab2"][i])
        W3a = W3a.at[r0:r1, c0:c1].set(params["aw3"][i])
        b3a = b3a.at[:, c0:c1].set(params["ab3"][i])

    wd = weight_dtype
    return dict(W1=W1.astype(wd), b1=b1, W2=W2.astype(wd), b2=b2,
                W3v=W3v.astype(wd), b3v=b3v, W3a=W3a.astype(wd), b3a=b3a)


# ----------------------------------- wrapper -------------------------------------
def _choose_batch_tile(B, batch_tile):
    """Batch tile: full batch for tiny B; otherwise a multiple of 8, capped at
    batch_tile, and sized so the grid has >= 2 steps (v7x megacore sharding)."""
    if B <= 16:
        return B
    tb = min(batch_tile, _round_up(pl.cdiv(B, 2), 8))
    return max(8, (tb // 8) * 8)


def split_policy_forward(x, rnn_hxs, masks, fused, num_outputs, batch_tile=4096):
    """Returns (value, action_mean, rnn_hxs), matching SplitPolicyBase.forward."""
    del masks  # unused by the module's forward
    B, num_inputs = x.shape
    HPAD = fused["W1"].shape[1]

    TB = _choose_batch_tile(B, batch_tile)   # sweepable: review suggests TB in {2048, 4096}
    grid = (pl.cdiv(B, TB),)

    # Advisory cost hint for XLA scheduling around the custom call.
    flops = 2 * B * HPAD * (num_inputs + HPAD + 1 + num_outputs)
    transcendentals = 2 * B * HPAD
    bytes_accessed = (
        x.size * x.dtype.itemsize
        + sum(int(v.size) * v.dtype.itemsize for v in fused.values())
        + B * (1 + num_outputs) * 4
    )

    # Weights/biases use constant index maps -> VMEM-resident across grid steps.
    # (Single-buffering them via pipeline_mode=pl.Buffered(1) only matters for much
    #  larger hidden sizes on v7x's 64 MiB VMEM; at H<=64 the footprint is <0.5 MiB.)
    value, action_mean = pl.pallas_call(
        _fused_policy_kernel,
        out_shape=(
            jax.ShapeDtypeStruct((B, 1), jnp.float32),
            jax.ShapeDtypeStruct((B, num_outputs), jnp.float32),
        ),
        grid_spec=pltpu.PrefetchScalarGridSpec(
            num_scalar_prefetch=0,
            grid=grid,
            in_specs=[
                pl.BlockSpec((TB, num_inputs), lambda i: (i, 0)),     # x: streamed per tile
                pl.BlockSpec((num_inputs, HPAD), lambda i: (0, 0)),   # W1 (bf16)
                pl.BlockSpec((1, HPAD), lambda i: (0, 0)),            # b1 (f32)
                pl.BlockSpec((HPAD, HPAD), lambda i: (0, 0)),         # W2 (bf16)
                pl.BlockSpec((1, HPAD), lambda i: (0, 0)),            # b2 (f32)
                pl.BlockSpec((HPAD, 1), lambda i: (0, 0)),            # W3v (bf16)
                pl.BlockSpec((1, 1), lambda i: (0, 0)),               # b3v (f32)
                pl.BlockSpec((HPAD, num_outputs), lambda i: (0, 0)),  # W3a (bf16)
                pl.BlockSpec((1, num_outputs), lambda i: (0, 0)),     # b3a (f32)
            ],
            out_specs=[
                pl.BlockSpec((TB, 1), lambda i: (i, 0)),              # value
                pl.BlockSpec((TB, num_outputs), lambda i: (i, 0)),    # action_mean
            ],
        ),
        compiler_params=pltpu.CompilerParams(
            dimension_semantics=("parallel",),      # shards batch tiles across v7x's 2 TCs
            vmem_limit_bytes=48 * 1024 * 1024,      # < v7x's 64 MiB physical VMEM
        ),
        cost_estimate=pl.CostEstimate(
            flops=int(flops),
            transcendentals=int(transcendentals),
            bytes_accessed=int(bytes_accessed),
        ),
    )(x, fused["W1"], fused["b1"], fused["W2"], fused["b2"],
      fused["W3v"], fused["b3v"], fused["W3a"], fused["b3a"])

    return value, action_mean, rnn_hxs


# ------------------------- deterministic parameter init -------------------------
def _orthogonal(key, fan_in, fan_out, gain):
    """Deterministic orthogonal-style init (columns orthonormal), scaled by gain."""
    n = max(fan_in, fan_out)
    a = jax.random.normal(key, (n, n), dtype=jnp.float32)
    q, _ = jnp.linalg.qr(a)
    return (gain * q[:fan_in, :fan_out]).astype(jnp.float32)


def make_params(key, num_inputs, num_outputs, hidden_size=64):
    assert num_inputs % 4 == 0 and num_outputs % 4 == 0
    each_in = num_inputs // 4
    each_out = num_outputs // 4
    gain_h = float(jnp.sqrt(2.0))

    keys = jax.random.split(key, 16)
    ki = iter(range(16))

    # critic_full
    cw1 = _orthogonal(keys[next(ki)], num_inputs, hidden_size, gain_h)
    cw2 = _orthogonal(keys[next(ki)], hidden_size, hidden_size, gain_h)
    cw3 = _orthogonal(keys[next(ki)], hidden_size, 1, 1.0)
    cb1 = jnp.zeros((1, hidden_size), jnp.float32)
    cb2 = jnp.zeros((1, hidden_size), jnp.float32)
    cb3 = jnp.zeros((1, 1), jnp.float32)

    # 4 actors, stacked along a leading axis
    aw1 = jnp.stack(
        [_orthogonal(keys[next(ki)], each_in, hidden_size, gain_h) for _ in range(4)]
    )
    aw2 = jnp.stack(
        [_orthogonal(keys[next(ki)], hidden_size, hidden_size, gain_h) for _ in range(4)]
    )
    aw3 = jnp.stack(
        [_orthogonal(keys[next(ki)], hidden_size, each_out, 0.02) for _ in range(4)]
    )
    ab1 = jnp.zeros((4, 1, hidden_size), jnp.float32)
    ab2 = jnp.zeros((4, 1, hidden_size), jnp.float32)
    ab3 = jnp.zeros((4, 1, each_out), jnp.float32)

    return dict(
        cw1=cw1, cb1=cb1, cw2=cw2, cb2=cb2, cw3=cw3, cb3=cb3,
        aw1=aw1, ab1=ab1, aw2=aw2, ab2=ab2, aw3=aw3, ab3=ab3,
    )


# ----------------------------- reference (pure JAX) -----------------------------
def reference_forward(x, params, each_in, each_out, dot_dtype=jnp.float32):
    """Unfused 5-MLP reference. dot_dtype=bfloat16 mirrors the kernel's MXU operand
    rounding exactly (padded lanes in the fused kernel are exact zeros)."""
    def mlp(xi, w1, b1, w2, b2, w3, b3):
        c = lambda a: a.astype(dot_dtype)
        h = jnp.tanh(jnp.dot(c(xi), c(w1), preferred_element_type=jnp.float32) + b1)
        h = jnp.tanh(jnp.dot(c(h), c(w2), preferred_element_type=jnp.float32) + b2)
        return jnp.dot(c(h), c(w3), preferred_element_type=jnp.float32) + b3

    value = mlp(x, params["cw1"], params["cb1"], params["cw2"], params["cb2"],
                params["cw3"], params["cb3"])
    ys = []
    for i in range(4):
        xi = x[:, i * each_in:(i + 1) * each_in]
        ys.append(mlp(xi, params["aw1"][i], params["ab1"][i],
                      params["aw2"][i], params["ab2"][i],
                      params["aw3"][i], params["ab3"][i]))
    return value, jnp.concatenate(ys, axis=1)


if __name__ == "__main__":
    key = jax.random.PRNGKey(0)
    k_param, k_x, k_x2 = jax.random.split(key, 3)

    num_inputs = 16      # -> each actor sees 4 input features
    num_outputs = 8      # -> each actor emits 2 outputs
    hidden_size = 32

    params = make_params(k_param, num_inputs, num_outputs, hidden_size)
    fused = build_fused_params(params, num_inputs, num_outputs, hidden_size)

    def run_and_check(xb):
        B = xb.shape[0]
        rnn_hxs = jnp.zeros((B, 1), jnp.float32)   # recurrent_hidden_state_size == 1
        masks = jnp.ones((B, 1), jnp.float32)
        value, action_mean, rnn_out = split_policy_forward(
            xb, rnn_hxs, masks, fused, num_outputs
        )
        jax.block_until_ready((value, action_mean, rnn_out))
        assert value.shape == (B, 1)
        assert action_mean.shape == (B, num_outputs)
        assert jnp.array_equal(rnn_out, rnn_hxs)
        # Tight check vs a reference that uses the same bf16 MXU-operand math.
        rv, rm = reference_forward(xb, params, num_inputs // 4, num_outputs // 4,
                                   dot_dtype=jnp.bfloat16)
        assert jnp.allclose(value, rv, atol=1e-3, rtol=1e-3)
        assert jnp.allclose(action_mean, rm, atol=1e-3, rtol=1e-3)
        # Loose semantic check vs the full-f32 (PyTorch-style) reference; the only
        # difference is bf16 rounding of the matmul operands.
        rv32, rm32 = reference_forward(xb, params, num_inputs // 4, num_outputs // 4)
        assert jnp.allclose(value, rv32, atol=1e-1, rtol=1e-1)
        assert jnp.allclose(action_mean, rm32, atol=1e-1, rtol=1e-1)

    # Small batch (single grid step).
    run_and_check(jax.random.normal(k_x, (2, num_inputs), dtype=jnp.float32))
    # Larger batch: >=2 grid steps (exercises the v7x megacore path) + ragged last tile.
    run_and_check(jax.random.normal(k_x2, (50, num_inputs), dtype=jnp.float32))

    print("KERNEL_OK")
</pallas_src>

<mosaic_0001>
module attributes {stable_mosaic.version = 11 : i64} {
  func.func @_fused_policy_kernel(%arg0: i32, %arg1: memref<2x16xf32, #tpu.memory_space<vmem>>, %arg2: memref<16x256xbf16, #tpu.memory_space<vmem>>, %arg3: memref<1x256xf32, #tpu.memory_space<vmem>>, %arg4: memref<256x256xbf16, #tpu.memory_space<vmem>>, %arg5: memref<1x256xf32, #tpu.memory_space<vmem>>, %arg6: memref<256x1xbf16, #tpu.memory_space<vmem>>, %arg7: memref<1x1xf32, #tpu.memory_space<vmem>>, %arg8: memref<256x8xbf16, #tpu.memory_space<vmem>>, %arg9: memref<1x8xf32, #tpu.memory_space<vmem>>, %arg10: memref<2x1xf32, #tpu.memory_space<vmem>>, %arg11: memref<2x8xf32, #tpu.memory_space<vmem>>) attributes {dimension_semantics = [#tpu.dimension_semantics<parallel>], iteration_bounds = array<i64: 1>, scalar_prefetch = 0 : i64, scratch_operands = 0 : i64, tpu.core_type = #tpu.core_type<tc>, window_params = [{transform_indices = @transform_0, window_bounds = array<i64: 2, 16>}, {pipeline_mode = #tpu.pipeline_mode<synchronous>, transform_indices = @transform_1, window_bounds = array<i64: 16, 256>}, {pipeline_mode = #tpu.pipeline_mode<synchronous>, transform_indices = @transform_2, window_bounds = array<i64: 1, 256>}, {pipeline_mode = #tpu.pipeline_mode<synchronous>, transform_indices = @transform_3, window_bounds = array<i64: 256, 256>}, {pipeline_mode = #tpu.pipeline_mode<synchronous>, transform_indices = @transform_4, window_bounds = array<i64: 1, 256>}, {pipeline_mode = #tpu.pipeline_mode<synchronous>, transform_indices = @transform_5, window_bounds = array<i64: 256, 1>}, {pipeline_mode = #tpu.pipeline_mode<synchronous>, transform_indices = @transform_6, window_bounds = array<i64: 1, 1>}, {pipeline_mode = #tpu.pipeline_mode<synchronous>, transform_indices = @transform_7, window_bounds = array<i64: 256, 8>}, {pipeline_mode = #tpu.pipeline_mode<synchronous>, transform_indices = @transform_8, window_bounds = array<i64: 1, 8>}, {transform_indices = @transform_9, window_bounds = array<i64: 2, 1>}, {transform_indices = @transform_10, window_bounds = array<i64: 2, 8>}]} {
    %c0 = arith.constant 0 : index
    %c0_0 = arith.constant 0 : index
    %0 = vector.load %arg1[%c0, %c0_0] : memref<2x16xf32, #tpu.memory_space<vmem>>, vector<2x16xf32>
    %1 = arith.truncf %0 : vector<2x16xf32> to vector<2x16xbf16>
    %c0_1 = arith.constant 0 : index
    %c0_2 = arith.constant 0 : index
    %2 = vector.load %arg2[%c0_1, %c0_2] : memref<16x256xbf16, #tpu.memory_space<vmem>>, vector<16x256xbf16>
    %cst = arith.constant dense<0.000000e+00> : vector<2x256xf32>
    %3 = tpu.matmul %1, %2, %cst {dimension_numbers = #tpu.dot_dimension_numbers<[1], [0], [0], [1], [0, 0, 1, 1], [], []>} : vector<2x16xbf16>, vector<16x256xbf16>, vector<2x256xf32> -> vector<2x256xf32>
    %c0_3 = arith.constant 0 : index
    %c0_4 = arith.constant 0 : index
    %4 = vector.load %arg3[%c0_3, %c0_4] : memref<1x256xf32, #tpu.memory_space<vmem>>, vector<1x256xf32>
    %5 = vector.broadcast %4 : vector<1x256xf32> to vector<2x256xf32>
    %6 = arith.addf %3, %5 : vector<2x256xf32>
    %7 = math.tanh %6 : vector<2x256xf32>
    %8 = arith.truncf %7 : vector<2x256xf32> to vector<2x256xbf16>
    %c0_5 = arith.constant 0 : index
    %c0_6 = arith.constant 0 : index
    %9 = vector.load %arg4[%c0_5, %c0_6] : memref<256x256xbf16, #tpu.memory_space<vmem>>, vector<256x256xbf16>
    %cst_7 = arith.constant dense<0.000000e+00> : vector<2x256xf32>
    %10 = tpu.matmul %8, %9, %cst_7 {dimension_numbers = #tpu.dot_dimension_numbers<[1], [0], [0], [1], [0, 0, 1, 1], [], []>} : vector<2x256xbf16>, vector<256x256xbf16>, vector<2x256xf32> -> vector<2x256xf32>
    %c0_8 = arith.constant 0 : index
    %c0_9 = arith.constant 0 : index
    %11 = vector.load %arg5[%c0_8, %c0_9] : memref<1x256xf32, #tpu.memory_space<vmem>>, vector<1x256xf32>
    %12 = vector.broadcast %11 : vector<1x256xf32> to vector<2x256xf32>
    %13 = arith.addf %10, %12 : vector<2x256xf32>
    %14 = math.tanh %13 : vector<2x256xf32>
    %15 = arith.truncf %14 : vector<2x256xf32> to vector<2x256xbf16>
    %c0_10 = arith.constant 0 : index
    %c0_11 = arith.constant 0 : index
    %16 = vector.load %arg6[%c0_10, %c0_11] : memref<256x1xbf16, #tpu.memory_space<vmem>>, vector<256x1xbf16>
    %cst_12 = arith.constant dense<0.000000e+00> : vector<2x1xf32>
    %17 = tpu.matmul %15, %16, %cst_12 {dimension_numbers = #tpu.dot_dimension_numbers<[1], [0], [0], [1], [0, 0, 1, 1], [], []>} : vector<2x256xbf16>, vector<256x1xbf16>, vector<2x1xf32> -> vector<2x1xf32>
    %c0_13 = arith.constant 0 : index
    %c0_14 = arith.constant 0 : index
    %18 = vector.load %arg7[%c0_13, %c0_14] : memref<1x1xf32, #tpu.memory_space<vmem>>, vector<1x1xf32>
    %19 = vector.broadcast %18 : vector<1x1xf32> to vector<2x1xf32>
    %20 = arith.addf %17, %19 : vector<2x1xf32>
    %c0_15 = arith.constant 0 : index
    %c0_16 = arith.constant 0 : index
    %21 = vector.load %arg10[%c0_15, %c0_16] : memref<2x1xf32, #tpu.memory_space<vmem>>, vector<2x1xf32>
    tpu.vector_store %arg10[%c0_15, %c0_16], %20 {strides = array<i32>} : memref<2x1xf32, #tpu.memory_space<vmem>>, vector<2x1xf32>,
    %c0_17 = arith.constant 0 : index
    %c0_18 = arith.constant 0 : index
    %22 = vector.load %arg8[%c0_17, %c0_18] : memref<256x8xbf16, #tpu.memory_space<vmem>>, vector<256x8xbf16>
    %cst_19 = arith.constant dense<0.000000e+00> : vector<2x8xf32>
    %23 = tpu.matmul %15, %22, %cst_19 {dimension_numbers = #tpu.dot_dimension_numbers<[1], [0], [0], [1], [0, 0, 1, 1], [], []>} : vector<2x256xbf16>, vector<256x8xbf16>, vector<2x8xf32> -> vector<2x8xf32>
    %c0_20 = arith.constant 0 : index
    %c0_21 = arith.constant 0 : index
    %24 = vector.load %arg9[%c0_20, %c0_21] : memref<1x8xf32, #tpu.memory_space<vmem>>, vector<1x8xf32>
    %25 = vector.broadcast %24 : vector<1x8xf32> to vector<2x8xf32>
    %26 = arith.addf %23, %25 : vector<2x8xf32>
    %c0_22 = arith.constant 0 : index
    %c0_23 = arith.constant 0 : index
    %27 = vector.load %arg11[%c0_22, %c0_23] : memref<2x8xf32, #tpu.memory_space<vmem>>, vector<2x8xf32>
    tpu.vector_store %arg11[%c0_22, %c0_23], %26 {strides = array<i32>} : memref<2x8xf32, #tpu.memory_space<vmem>>, vector<2x8xf32>,
    return
  }
  func.func @transform_0(%arg0: i32) -> (i32, i32) {
    %c0_i32 = arith.constant 0 : i32
    %c0_i32_0 = arith.constant 0 : i32
    return %arg0, %c0_i32 : i32, i32
  }
  func.func @transform_1(%arg0: i32) -> (i32, i32) {
    %c0_i32 = arith.constant 0 : i32
    %c0_i32_0 = arith.constant 0 : i32
    %c0_i32_1 = arith.constant 0 : i32
    return %c0_i32, %c0_i32_0 : i32, i32
  }
  func.func @transform_2(%arg0: i32) -> (i32, i32) {
    %c0_i32 = arith.constant 0 : i32
    %c0_i32_0 = arith.constant 0 : i32
    %c0_i32_1 = arith.constant 0 : i32
    return %c0_i32, %c0_i32_0 : i32, i32
  }
  func.func @transform_3(%arg0: i32) -> (i32, i32) {
    %c0_i32 = arith.constant 0 : i32
    %c0_i32_0 = arith.constant 0 : i32
    %c0_i32_1 = arith.constant 0 : i32
    return %c0_i32, %c0_i32_0 : i32, i32
  }
  func.func @transform_4(%arg0: i32) -> (i32, i32) {
    %c0_i32 = arith.constant 0 : i32
    %c0_i32_0 = arith.constant 0 : i32
    %c0_i32_1 = arith.constant 0 : i32
    return %c0_i32, %c0_i32_0 : i32, i32
  }
  func.func @transform_5(%arg0: i32) -> (i32, i32) {
    %c0_i32 = arith.constant 0 : i32
    %c0_i32_0 = arith.constant 0 : i32
    %c0_i32_1 = arith.constant 0 : i32
    return %c0_i32, %c0_i32_0 : i32, i32
  }
  func.func @transform_6(%arg0: i32) -> (i32, i32) {
    %c0_i32 = arith.constant 0 : i32
    %c0_i32_0 = arith.constant 0 : i32
    %c0_i32_1 = arith.constant 0 : i32
    return %c0_i32, %c0_i32_0 : i32, i32
  }
  func.func @transform_7(%arg0: i32) -> (i32, i32) {
    %c0_i32 = arith.constant 0 : i32
    %c0_i32_0 = arith.constant 0 : i32
    %c0_i32_1 = arith.constant 0 : i32
    return %c0_i32, %c0_i32_0 : i32, i32
  }
  func.func @transform_8(%arg0: i32) -> (i32, i32) {
    %c0_i32 = arith.constant 0 : i32
    %c0_i32_0 = arith.constant 0 : i32
    %c0_i32_1 = arith.constant 0 : i32
    return %c0_i32, %c0_i32_0 : i32, i32
  }
  func.func @transform_9(%arg0: i32) -> (i32, i32) {
    %c0_i32 = arith.constant 0 : i32
    %c0_i32_0 = arith.constant 0 : i32
    return %arg0, %c0_i32 : i32, i32
  }
  func.func @transform_10(%arg0: i32) -> (i32, i32) {
    %c0_i32 = arith.constant 0 : i32
    %c0_i32_0 = arith.constant 0 : i32
    return %arg0, %c0_i32 : i32, i32
  }
}

</mosaic_0001>

<bundles_post_ra>
// kernel: tpu_custom_call.1
= control target key start
LH: loop header
LB: loop body
LE: loop exit
PB: predicated region body
PF: predicated region fallthrough
CT: control target
= control target key end

     0   :  { %s1345_s0 = inlined_call_operand.vmem [shape: f32[2,16], index: 0, kind: input, shape index: {}]   ;;  %s1346_s1 = inlined_call_operand.vmem [shape: bf16[16,256], index: 1, kind: input, shape index: {}]   ;;  %s1347_s2 = inlined_call_operand.hbm [shape: f32[1,256], index: 2, kind: input, shape index: {}]   ;;  %s1348_s3 = inlined_call_operand.vmem [shape: bf16[256,256], index: 3, kind: input, shape index: {}]   ;;  %s1349_s4 = inlined_call_operand.hbm [shape: f32[1,256], index: 4, kind: input, shape index: {}]   ;;  %s1350_s5 = inlined_call_operand.vmem [shape: bf16[256,1], index: 5, kind: input, shape index: {}]   ;;  %s1351_s6 = inlined_call_operand.<no memory space> [shape: f32[1,1], index: 6, kind: input, shape index: {}]   ;;  %s1352_s7 = inlined_call_operand.vmem [shape: bf16[256,8], index: 7, kind: input, shape index: {}]   ;;  %s1353_s8 = inlined_call_operand.vmem [shape: f32[1,8], index: 8, kind: input, shape index: {}]   ;;  %s1354_s9 = inlined_call_operand.vmem [shape: f32[2,1], index: 9, kind: output, shape index: {0}]   ;;  %s1355_s10 = inlined_call_operand.hbm [shape: f32[2,8], index: 10, kind: output, shape index: {1}]  }
   0x1   :  { %v16_v0 = vstv %s1351_s6 }
   0x2   :  { %17 = vst [vmem:[#allocation2] sm:$0x1] %v16_v0 }
   0x3   :  { %18 = vsyncpa [#allocation4], 0 }
   0x4   :  { %19 = vsyncpa [#allocation7], 0 }
   0x5   :  { %20 = vsyncpa [#allocation5], 0  ;;  %s1040_s15 = smov [#allocation3]   ;;  %s1041_s17 = smov [#allocation6]  }
   0x6   :  { %s31_s16 = sshll.u32 %s1040_s15, 4  ;;  %s43_s18 = sshll.u32 %s1041_s17, 4  ;;  %s32_s16 = int_to_ptr.vmem [resolvable:$true] %s31_s16  ;;  %s44_s18 = int_to_ptr.vmem [resolvable:$true] %s43_s18 }
   0x7   :  { %s968_s21 = scalar_lea.hbm %s1347_s2, 32 }
   0x8   :  { %p969_p0 = scmp.ne.s32.totalorder %s1347_s2, %s968_s21  ;;  %p972_p1 = scmp.lt.u32.totalorder %s968_s21, %s1347_s2 }
   0xa   :  { %p974_p2 = pnand %p972_p1, %p969_p0 }
   0xc   :  { %977 = shalt.err (!%p974_p2)
}
   0xd   :  { %s978_s25 = scalar_lea.vmem %s32_s16, 32  ;;  %p983_p4 = scmp.lt.s32.totalorder %s32_s16, %s32_s16 }
   0xe   :  { %p979_p3 = scmp.ne.s32.totalorder %s32_s16, %s978_s25  ;;  %p984_p5 = scmp.lt.s32.totalorder %s978_s25, %s978_s25 }
  0x10   :  { %p985_p6 = por %p984_p5, %p983_p4 }
  0x12   :  { %p986_p7 = pnand %p985_p6, %p979_p3 }
  0x14   :  { %989 = shalt.err (!%p986_p7)
}
  0x15   :  { %34 = dma.hbm_to_vmem [thread:$0]  %s1347_s2, 32, %s32_s16, [#allocation4]  }
  0x16   :  { %s990_s30 = scalar_lea.hbm %s1349_s4, 32 }
  0x17   :  { %p991_p8 = scmp.ne.s32.totalorder %s1349_s4, %s990_s30  ;;  %p994_p9 = scmp.lt.u32.totalorder %s990_s30, %s1349_s4 }
  0x19   :  { %p996_p10 = pnand %p994_p9, %p991_p8 }
  0x1b   :  { %999 = shalt.err (!%p996_p10)
}
  0x1c   :  { %s1000_s15 = scalar_lea.vmem %s44_s18, 32  ;;  %p1005_p12 = scmp.lt.s32.totalorder %s44_s18, %s44_s18 }
  0x1d   :  { %p1001_p11 = scmp.ne.s32.totalorder %s44_s18, %s1000_s15  ;;  %p1006_p13 = scmp.lt.s32.totalorder %s1000_s15, %s1000_s15 }
  0x1f   :  { %p1007_p0 = por %p1006_p13, %p1005_p12 }
  0x21   :  { %p1008_p1 = pnand %p1007_p0, %p1001_p11 }
  0x23   :  { %1011 = shalt.err (!%p1008_p1)
}
  0x24   :  { %46 = dma.hbm_to_vmem [thread:$0]  %s1349_s4, 32, %s44_s18, [#allocation7]  }
  0x25   :  { %1034 = dma.done.wait [#allocation4], 32  }
  0x26   :  { %1035 = vsyncadd [#allocation4], 4294967264 }
  0x27   :  { %1036 = dma.done.wait [#allocation7], 32  }
  0x28   :  { %1037 = vsyncadd [#allocation7], 4294967264  ;;  %v1042_v1 = vmov 0   ;;  %v877_v2 = vld [vmem:[%s1346_s1 + $0x4] ss:$8 sps:$4 sm:$0xff]   ;;  %vm88_vm0 = vcmask 130048   ;;  %v68_v46 = vlaneseq }
  0x29   :  { %124 = vmatprep.mubr.bf16.mxu0 %v1042_v1  ;;  %v879_v3 = vld [vmem:[%s1346_s1] ss:$8 sps:$4 sm:$0xff]   ;;  %92 = vmatprep.subr.bf16.mxu0 %v877_v2  ;;  %v880_v6 = vld [vmem:[%s1348_s3 + $0x4] ss:$8 sps:$4 sm:$0xff]   ;;  %v883_v8 = vld [vmem:[%s1348_s3 + $0x14] ss:$8 sps:$4 sm:$0xff]  }
  0x2a   :  { %v62_v4 = vld [vmem:[%s1345_s0] sm:$0x3]  ;;  %93 = vmatpush1.bf16.msra.mxu0 %v879_v3  ;;  %341 = vmatprep.subr.bf16.mxu1 %v880_v6  ;;  %v885_v9 = vld [vmem:[%s1348_s3 + $0x10] ss:$8 sps:$4 sm:$0xff]   ;;  %v886_v10 = vld [vmem:[%s1348_s3 + $0x24] ss:$8 sps:$4 sm:$0xff]  }
  0x2b   :  { %v63_v5 = vpack.c.bf16 %v62_v4, %v62_v4  ;;  %v882_v7 = vld [vmem:[%s1348_s3] ss:$8 sps:$4 sm:$0xff]   ;;  %v889_v12 = vld [vmem:[%s1348_s3 + $0x34] ss:$8 sps:$4 sm:$0xff]   ;;  %v891_v13 = vld [vmem:[%s1348_s3 + $0x30] ss:$8 sps:$4 sm:$0xff]  }
  0x2c   :  { %342 = vmatpush1.bf16.msra.mxu1 %v882_v7  ;;  %v888_v11 = vld [vmem:[%s1348_s3 + $0x20] ss:$8 sps:$4 sm:$0xff]   ;;  %v892_v14 = vld [vmem:[%s1348_s3 + $0x44] ss:$8 sps:$4 sm:$0xff]   ;;  %v895_v16 = vld [vmem:[%s1348_s3 + $0x54] ss:$8 sps:$4 sm:$0xff]  }
  0x2d   :  { %762 = vmatmul.mubr.msk.bf16.vlgmr.msra.gmra.mrb[0].mxu0 %vm88_vm0, %v63_v5  ;;  %343 = vmatprep.subr.bf16.mxu1 %v883_v8  ;;  %v894_v15 = vld [vmem:[%s1348_s3 + $0x40] ss:$8 sps:$4 sm:$0xff]   ;;  %v897_v17 = vld [vmem:[%s1348_s3 + $0x50] ss:$8 sps:$4 sm:$0xff]   ;;  %v898_v18 = vld [vmem:[%s1348_s3 + $0x64] ss:$8 sps:$4 sm:$0xff]  }
  0x2e   :  { %v900_v19 = vld [vmem:[%s1348_s3 + $0x60] ss:$8 sps:$4 sm:$0xff]   ;;  %v901_v20 = vld [vmem:[%s1348_s3 + $0x74] ss:$8 sps:$4 sm:$0xff]   ;;  %v903_v21 = vld [vmem:[%s1348_s3 + $0x70] ss:$8 sps:$4 sm:$0xff]  }
  0x2f   :  { %v904_v22 = vld [vmem:[%s1348_s3 + $0x84] ss:$8 sps:$4 sm:$0xff]   ;;  %v906_v23 = vld [vmem:[%s1348_s3 + $0x80] ss:$8 sps:$4 sm:$0xff]   ;;  %v907_v24 = vld [vmem:[%s1348_s3 + $0x94] ss:$8 sps:$4 sm:$0xff]  }
  0x30   :  { %344 = vmatpush1.bf16.msra.mxu1 %v885_v9  ;;  %v909_v25 = vld [vmem:[%s1348_s3 + $0x90] ss:$8 sps:$4 sm:$0xff]   ;;  %v910_v26 = vld [vmem:[%s1348_s3 + $0xa4] ss:$8 sps:$4 sm:$0xff]   ;;  %v912_v27 = vld [vmem:[%s1348_s3 + $0xa0] ss:$8 sps:$4 sm:$0xff]  }
  0x31   :  { %345 = vmatprep.subr.bf16.mxu1 %v886_v10  ;;  %v913_v28 = vld [vmem:[%s1348_s3 + $0xb4] ss:$8 sps:$4 sm:$0xff]   ;;  %v915_v29 = vld [vmem:[%s1348_s3 + $0xb0] ss:$8 sps:$4 sm:$0xff]   ;;  %v916_v30 = vld [vmem:[%s1348_s3 + $0xc4] ss:$8 sps:$4 sm:$0xff]  }
  0x32   :  { %v918_v31 = vld [vmem:[%s1348_s3 + $0xc0] ss:$8 sps:$4 sm:$0xff]   ;;  %v919_v32 = vld [vmem:[%s1348_s3 + $0xd4] ss:$8 sps:$4 sm:$0xff]   ;;  %v921_v33 = vld [vmem:[%s1348_s3 + $0xd0] ss:$8 sps:$4 sm:$0xff]  }
  0x33   :  { %v922_v34 = vld [vmem:[%s1348_s3 + $0xe4] ss:$8 sps:$4 sm:$0xff]   ;;  %v924_v35 = vld [vmem:[%s1348_s3 + $0xe0] ss:$8 sps:$4 sm:$0xff]   ;;  %v925_v36 = vld [vmem:[%s1348_s3 + $0xf4] ss:$8 sps:$4 sm:$0xff]  }
  0x34   :  { %346 = vmatpush1.bf16.msra.mxu1 %v888_v11  ;;  %v927_v37 = vld [vmem:[%s1348_s3 + $0xf0] ss:$8 sps:$4 sm:$0xff]   ;;  %v928_v38 = vld [vmem:[%s1350_s5 + $0x40] sm:$0xff]   ;;  %v930_v40 = vld [vmem:[%s1350_s5 + $0x48] sm:$0xff]   ;;  %v69_v47 = vshrl.u32 %v68_v46, 7  ;;  %vm561_vm1 = vcmask 1024  }
  0x35   :  { %347 = vmatprep.subr.bf16.mxu1 %v889_v12  ;;  %v929_v39 = vld [vmem:[%s1350_s5] sm:$0xff]   ;;  %829 = vmatprep.subr.bf16.mxu0 %v928_v38  ;;  %v931_v41 = vld [vmem:[%s1350_s5 + $0x8] sm:$0xff]   ;;  %v932_v42 = vld [vmem:[%s1350_s5 + $0x50] sm:$0xff]   ;;  %vm738_vm2 = vcmask 58368  }
  0x36   :  { %830 = vmatpush3.bf16.msra.mxu0 %v929_v39  ;;  %v933_v43 = vld [vmem:[%s1350_s5 + $0x10] sm:$0xff]   ;;  %v934_v44 = vld [vmem:[%s1350_s5 + $0x58] sm:$0xff]   ;;  %v70_v48 = vsub.s32 0, %v69_v47  ;;  %v66_v49 = vld [vmem:[#allocation3] sm:$0x3]  ;;  %v74_v50 = vsub.s32 1, %v69_v47 }
  0x37   :  { %831 = vmatprep.subr.bf16.mxu0 %v930_v40  ;;  %v935_v45 = vld [vmem:[%s1350_s5 + $0x18] sm:$0xff]   ;;  %v936_v63 = vld [vmem:[%s1350_s5 + $0x60] sm:$0xff]   ;;  %v938_v1 = vld [vmem:[%s1350_s5 + $0x68] sm:$0xff]  }
  0x38   :  { %348 = vmatpush1.bf16.msra.mxu1 %v891_v13  ;;  %v71_v51 = vrot.slane %v66_v49, %v70_v48  ;;  %v75_v52 = vrot.slane %v66_v49, %v74_v50  ;;  %v937_v0 = vld [vmem:[%s1350_s5 + $0x20] sm:$0xff]   ;;  %v939_v2 = vld [vmem:[%s1350_s5 + $0x28] sm:$0xff]   ;;  %v940_v3 = vld [vmem:[%s1350_s5 + $0x70] sm:$0xff]  }
  0x39   :  { %349 = vmatprep.subr.bf16.mxu1 %v892_v14  ;;  %v941_v4 = vld [vmem:[%s1350_s5 + $0x30] sm:$0xff]   ;;  %v942_v5 = vld [vmem:[%s1350_s5 + $0x78] sm:$0xff]   ;;  %v944_v7 = vld [vmem:[%s1352_s7 + $0x40] sm:$0xff]  }
  0x3a   :  { %832 = vmatpush3.bf16.msra.mxu0 %v931_v41  ;;  %v943_v6 = vld [vmem:[%s1350_s5 + $0x38] sm:$0xff]   ;;  %v169_v8 = vld [vmem:[#allocation6] sm:$0x3] }
  0x3b   :  { %833 = vmatprep.subr.bf16.mxu0 %v932_v42  ;;  %v174_v9 = vrot.slane %v169_v8, %v70_v48  ;;  %v178_v10 = vrot.slane %v169_v8, %v74_v50 }
  0x3c   :  { %350 = vmatpush1.bf16.msra.mxu1 %v894_v15 }
  0x3d   :  { %351 = vmatprep.subr.bf16.mxu1 %v895_v16 }
  0x3e   :  { %834 = vmatpush3.bf16.msra.mxu0 %v933_v43 }
  0x3f   :  { %835 = vmatprep.subr.bf16.mxu0 %v934_v44  ;;  %v812_v44 = vld [vmem:[%s1353_s8] ss:$0 sm:$0xff] }
  0x40   :  { %352 = vmatpush1.bf16.msra.mxu1 %v897_v17 }
  0x41   :  { %353 = vmatprep.subr.bf16.mxu1 %v898_v18 }
  0x42   :  { %836 = vmatpush3.bf16.msra.mxu0 %v935_v45 }
  0x43   :  { %837 = vmatprep.subr.bf16.mxu0 %v936_v63 }
  0x44   :  { %354 = vmatpush1.bf16.msra.mxu1 %v900_v19 }
  0x45   :  { %355 = vmatprep.subr.bf16.mxu1 %v901_v20  ;;  %v945_v20 = vld [vmem:[%s1352_s7] sm:$0xff]  }
  0x46   :  { %838 = vmatpush3.bf16.msra.mxu0 %v937_v0 }
  0x47   :  { %839 = vmatprep.subr.bf16.mxu0 %v938_v1 }
  0x48   :  { %356 = vmatpush1.bf16.msra.mxu1 %v903_v21 }
  0x49   :  { %357 = vmatprep.subr.bf16.mxu1 %v904_v22  ;;  %v946_v22 = vld [vmem:[%s1352_s7 + $0x48] sm:$0xff]  }
  0x4a   :  { %840 = vmatpush3.bf16.msra.mxu0 %v939_v2 }
  0x4b   :  { %841 = vmatprep.subr.bf16.mxu0 %v940_v3 }
  0x4c   :  { %358 = vmatpush1.bf16.msra.mxu1 %v906_v23  ;;  %v947_v23 = vld [vmem:[%s1352_s7 + $0x8] sm:$0xff]  }
  0x4d   :  { %359 = vmatprep.subr.bf16.mxu1 %v907_v24  ;;  %v948_v24 = vld [vmem:[%s1352_s7 + $0x50] sm:$0xff]  }
  0x4e   :  { %842 = vmatpush3.bf16.msra.mxu0 %v941_v4 }
  0x4f   :  { %843 = vmatprep.subr.bf16.mxu0 %v942_v5 }
  0x50   :  { %360 = vmatpush1.bf16.msra.mxu1 %v909_v25  ;;  %v949_v25 = vld [vmem:[%s1352_s7 + $0x10] sm:$0xff]  }
  0x51   :  { %361 = vmatprep.subr.bf16.mxu1 %v910_v26  ;;  %v950_v26 = vld [vmem:[%s1352_s7 + $0x58] sm:$0xff]  }
  0x52   :  { %844 = vmatpush3.bf16.msra.mxu0 %v943_v6 }
  0x53   :  { %851 = vmatprep.subr.bf16.mxu0 %v944_v7 }
  0x54   :  { %362 = vmatpush1.bf16.msra.mxu1 %v912_v27  ;;  %v951_v27 = vld [vmem:[%s1352_s7 + $0x18] sm:$0xff]  }
  0x55   :  { %363 = vmatprep.subr.bf16.mxu1 %v913_v28  ;;  %v952_v28 = vld [vmem:[%s1352_s7 + $0x60] sm:$0xff]  }
  0x58   :  { %364 = vmatpush1.bf16.msra.mxu1 %v915_v29  ;;  %v953_v29 = vld [vmem:[%s1352_s7 + $0x20] sm:$0xff]  }
  0x59   :  { %365 = vmatprep.subr.bf16.mxu1 %v916_v30  ;;  %v954_v30 = vld [vmem:[%s1352_s7 + $0x68] sm:$0xff]  }
  0x5c   :  { %366 = vmatpush1.bf16.msra.mxu1 %v918_v31  ;;  %v955_v31 = vld [vmem:[%s1352_s7 + $0x28] sm:$0xff]  }
  0x5d   :  { %367 = vmatprep.subr.bf16.mxu1 %v919_v32  ;;  %v956_v32 = vld [vmem:[%s1352_s7 + $0x70] sm:$0xff]  }
  0x60   :  { %368 = vmatpush1.bf16.msra.mxu1 %v921_v33  ;;  %v957_v33 = vld [vmem:[%s1352_s7 + $0x30] sm:$0xff]  }
  0x61   :  { %369 = vmatprep.subr.bf16.mxu1 %v922_v34  ;;  %v958_v34 = vld [vmem:[%s1352_s7 + $0x78] sm:$0xff]  }
  0x64   :  { %370 = vmatpush1.bf16.msra.mxu1 %v924_v35  ;;  %v959_v35 = vld [vmem:[%s1352_s7 + $0x38] sm:$0xff]   ;;  %s1043_s7 = smov [#allocation8]  }
  0x65   :  { %371 = vmatprep.subr.bf16.mxu1 %v925_v36  ;;  %s748_s24 = sshll.u32 %s1043_s7, 4  ;;  %s749_s24 = int_to_ptr.vmem [resolvable:$true] %s748_s24 }
  0x66   :  { %s1012_s6 = scalar_lea.vmem %s749_s24, 32  ;;  %p1017_p3 = scmp.lt.s32.totalorder %s749_s24, %s749_s24 }
  0x67   :  { %p1013_p2 = scmp.ne.s32.totalorder %s749_s24, %s1012_s6  ;;  %p1018_p4 = scmp.lt.s32.totalorder %s1012_s6, %s1012_s6 }
  0x68   :  { %372 = vmatpush1.bf16.msra.mxu1 %v927_v37  ;;  %v795_v37 = vld [vmem:[#allocation2] ss:$0 sm:$0xff] }
  0x69   :  { %p1019_p5 = por %p1018_p4, %p1017_p3 }
  0x6b   :  { %p1020_p6 = pnand %p1019_p5, %p1013_p2 }
 0x100   :  { %v126_v53 = vpop.f32.mrb[0].mxu0 }
 0x101   :  { %v127_v54 = vadd.f32 %v126_v53, %v71_v51  ;;  %v128_v55 = vpop.f32.mrb[1].mxu0 }
 0x102   :  { %v129_v56 = vadd.f32 %v128_v55, %v75_v52  ;;  %v130_v57 = vpop.f32.mrb[2].mxu0 }
 0x103   :  { %960 = vtanh.f32 %v127_v54  ;;  %v131_v58 = vpop.f32.mrb[3].mxu0 }
 0x104   :  { %962 = vtanh.f32 %v129_v56 }
 0x10d   :  { %v961_v59 = vpop.eup %960 }
 0x10e   :  { %v963_v60 = vpop.eup %962  ;;  %v135_v62 = vpack.c.bf16 %v961_v59, %v961_v59 }
 0x10f   :  { %v136_v61 = vpack.c.bf16 %v963_v60, %v963_v60 }
 0x111   :  { %373 = vmatprep.mubr.bf16.mxu1 %v136_v61 }
 0x112   :  { %374 = vmatmul.mubr.bf16.vlgmr.msra.gmra.mrb[0].mxu1 %v135_v62 }
 0x1e5   :  { %v375_v11 = vpop.f32.mrb[0].mxu1 }
 0x1e6   :  { %v376_v12 = vadd.f32 %v375_v11, %v174_v9  ;;  %v377_v13 = vpop.f32.mrb[1].mxu1 }
 0x1e7   :  { %v378_v14 = vadd.f32 %v377_v13, %v178_v10  ;;  %v379_v15 = vpop.f32.mrb[2].mxu1 }
 0x1e8   :  { %964 = vtanh.f32 %v376_v12  ;;  %v380_v16 = vpop.f32.mrb[3].mxu1 }
 0x1e9   :  { %966 = vtanh.f32 %v378_v14 }
 0x1f2   :  { %v965_v17 = vpop.eup %964 }
 0x1f3   :  { %v967_v18 = vpop.eup %966  ;;  %v384_v21 = vpack.c.bf16 %v965_v17, %v965_v17 }
 0x1f4   :  { %v385_v19 = vpack.c.bf16 %v967_v18, %v967_v18 }
 0x1f6   :  { %553 = vmatprep.mubr.bf16.mxu0 %v385_v19 }
 0x1f7   :  { %554 = vmatmul.mubr.bf16.vlgmr.msra.gmra.mrb[4].mxu0 %v384_v21 }
 0x1f8   :  { %852 = vmatpush3.bf16.msra.mxu0 %v945_v20  ;;  %730 = vmatprep.mubr.bf16.mxu0 %v385_v19 }
 0x1f9   :  { %853 = vmatprep.subr.bf16.mxu0 %v946_v22 }
 0x1fc   :  { %854 = vmatpush3.bf16.msra.mxu0 %v947_v23 }
 0x1fd   :  { %855 = vmatprep.subr.bf16.mxu0 %v948_v24 }
 0x200   :  { %856 = vmatpush3.bf16.msra.mxu0 %v949_v25 }
 0x201   :  { %857 = vmatprep.subr.bf16.mxu0 %v950_v26 }
 0x204   :  { %858 = vmatpush3.bf16.msra.mxu0 %v951_v27 }
 0x205   :  { %859 = vmatprep.subr.bf16.mxu0 %v952_v28 }
 0x208   :  { %860 = vmatpush3.bf16.msra.mxu0 %v953_v29 }
 0x209   :  { %861 = vmatprep.subr.bf16.mxu0 %v954_v30 }
 0x20c   :  { %862 = vmatpush3.bf16.msra.mxu0 %v955_v31 }
 0x20d   :  { %863 = vmatprep.subr.bf16.mxu0 %v956_v32 }
 0x210   :  { %864 = vmatpush3.bf16.msra.mxu0 %v957_v33 }
 0x211   :  { %865 = vmatprep.subr.bf16.mxu0 %v958_v34 }
 0x214   :  { %866 = vmatpush3.bf16.msra.mxu0 %v959_v35 }
 0x217   :  { %731 = vmatmul.mubr.bf16.vlgmr.msra.gmra.mrb[8].mxu0 %v384_v21 }
 0x2ca   :  { %v845_v36 = vpop.f32.mrb[4].mxu0 }
 0x2cb   :  { %v846_v38 = vpop.f32.mrb[5].mxu0 }
 0x2cc   :  { %v847_v39 = vadd.f32 %v846_v38, %v845_v36  ;;  %v848_v40 = vpop.f32.mrb[6].mxu0 }
 0x2cd   :  { %v849_v41 = vpop.f32.mrb[7].mxu0 }
 0x2ce   :  { %v556_v42 = vadd.f32 %v847_v39, %v795_v37 }
 0x2d0   :  { %562 = vst.msk [vmem:[%s1354_s9] sm:$0x3] %vm561_vm1, %v556_v42 }
 0x2ea   :  { %v867_v43 = vpop.f32.mrb[8].mxu0 }
 0x2eb   :  { %v868_v45 = vpop.f32.mrb[9].mxu0 }
 0x2ec   :  { %v869_v46 = vadd.f32 %v868_v45, %v867_v43  ;;  %v870_v47 = vpop.f32.mrb[10].mxu0 }
 0x2ed   :  { %v871_v48 = vpop.f32.mrb[11].mxu0 }
 0x2ee   :  { %v733_v49 = vadd.f32 %v869_v46, %v812_v44 }
 0x2f0   :  { %739 = vst.msk [vmem:[#allocation8] sm:$0x3] %vm738_vm2, %v733_v49 }
 0x2f1   :  { %1023 = shalt.err (!%p1020_p6)
}
 0x2f2   :  { %s1024_s8 = scalar_lea.hbm %s1355_s10, 32 }
 0x2f3   :  { %p1025_p7 = scmp.ne.s32.totalorder %s1355_s10, %s1024_s8  ;;  %p1028_p8 = scmp.lt.u32.totalorder %s1024_s8, %s1355_s10 }
 0x2f5   :  { %p1030_p9 = pnand %p1028_p8, %p1025_p7 }
 0x2f7   :  { %1033 = shalt.err (!%p1030_p9)
}
 0x2f8   :  { %751 = dma.vmem_to_hbm [thread:$0]  %s749_s24, 32, %s1355_s10, [#allocation5]  }
 0x2f9   :  { %1038 = dma.done.wait [#allocation5], 32  }
 0x2fa   :  { %1039 = vsyncadd [#allocation5], 4294967264 }
 0x2fb   :  { %757 = vsyncpa [#allocation4], 1 }
 0x2fc   :  { %758 = vsyncpa [#allocation7], 1 }
 0x2fd   :  { %759 = vsyncpa [#allocation5], 1 }

</bundles_post_ra>
